<compile_context>
chip_gen: v7x
topology: tpu7x:2x2x1
jax: 0.10.0
libtpu: 0.0.40
codegen_flags: <defaults>
</compile_context>

<pallas_src>
import jax
import jax.numpy as jnp
from jax.experimental import pallas as pl
from jax.experimental.pallas import tpu as pltpu


def _round_up(n, m):
    return ((n + m - 1) // m) * m


# ----------------------------------------------------------------------------
# Fused kernel: all RNN layers + FC in one grid-less invocation.
#   refs = [x2, (w_stack_0, b_0), ..., (w_stack_{L-1}, b_{L-1}), w_fc_pad, b_fc_pad, out]
#     x2        : (B, S*Din)  batch-major; time t occupies lanes [t*Din, (t+1)*Din)
#     w_stack_l : (Din_l + H, H) = concat([W_ih_l^T, W_hh_l^T], axis=0)
#     b_l       : (1, H)  (= b_ih + b_hh)
#     w_fc_pad  : (H, O_pad), b_fc_pad : (1, O_pad)   (zero-padded to 128-lane multiple)
#     out       : (num_layer*B, O_pad); row r = layer r//B, batch r%B
# ----------------------------------------------------------------------------
def _build_fused_kernel(num_layer, S, B, Din, H, O_pad):
    def kernel(*refs):
        x_ref = refs[0]
        out_ref = refs[-1]
        wrefs = refs[1:-1]  # 2*num_layer layer params + (w_fc_pad, b_fc_pad)

        # Loop-invariant loads / broadcasts hoisted once (JAX does not CSE these).
        x2 = x_ref[...]                                                   # (B, S*Din)
        x_t = [x2[:, t * Din:(t + 1) * Din] for t in range(S)]            # static lane slices
        w_stk = [wrefs[2 * l][...] for l in range(num_layer)]             # (Kin_l + H, H)
        w_ih_only = [w_stk[l][: (Din if l == 0 else H), :] for l in range(num_layer)]
        b_bc = [jnp.broadcast_to(wrefs[2 * l + 1][...], (B, H)) for l in range(num_layer)]
        w_fc = wrefs[2 * num_layer][...]                                  # (H, O_pad)
        b_fc = jnp.broadcast_to(wrefs[2 * num_layer + 1][...], (B, O_pad))

        # Wavefront over (layer, time): at step w compute every h_l[t] with l + t == w.
        # Process layers in DECREASING l so layer l still reads the wavefront-(w-1) value of
        # h_cur[l-1] before layer l-1 overwrites it.
        h_cur = [None] * num_layer
        for w in range(S + num_layer - 1):
            l_hi = min(w, num_layer - 1)
            l_lo = max(0, w - (S - 1))
            for l in range(l_hi, l_lo - 1, -1):
                t = w - l
                inp = x_t[t] if l == 0 else h_cur[l - 1]
                if t == 0:
                    # h_{-1} == 0 (PyTorch default) -> only the W_ih^T block contributes.
                    pre = jnp.dot(inp, w_ih_only[l], preferred_element_type=jnp.float32)
                else:
                    lhs = jnp.concatenate([inp, h_cur[l]], axis=1)        # (B, Kin_l + H)
                    pre = jnp.dot(lhs, w_stk[l], preferred_element_type=jnp.float32)
                h = jnp.maximum(pre + b_bc[l], 0.0)
                h_cur[l] = h
                if t == S - 1:
                    # Layer l finished: fuse its FC and store a lane-dense (B, O_pad) block.
                    out_ref[l * B:(l + 1) * B, :] = (
                        jnp.dot(h, w_fc, preferred_element_type=jnp.float32) + b_fc
                    )

    return kernel


def rnn_model_forward(x, params, num_layer):
    """x: (B, S, input_dim) batch-first float32 -> (B, num_layer, output_dim)."""
    B, S, Din = x.shape
    H = params["w_hh_t_0"].shape[0]
    O = params["w_fc_t"].shape[1]
    O_pad = params["w_fc_pad"].shape[1]

    # Contiguous reshape only (no transpose, no extra HBM round-trip).
    x2 = x.reshape(B, S * Din)

    args = [x2]
    for l in range(num_layer):
        args += [params[f"w_stack_{l}"], params[f"b_{l}"]]
    args += [params["w_fc_pad"], params["b_fc_pad"]]

    # Advisory cost estimate so XLA schedules the surrounding reshape/permute well.
    flops = 0
    for l in range(num_layer):
        kin = Din if l == 0 else H
        flops += 2 * B * kin * H                  # t == 0 step
        flops += (S - 1) * 2 * B * (kin + H) * H  # stacked steps
        flops += 2 * B * H * O_pad                # fused FC for this layer
    bytes_accessed = sum(int(a.size) * a.dtype.itemsize for a in args)
    bytes_accessed += num_layer * B * O_pad * 4

    vmem_spec = pl.BlockSpec(memory_space=pltpu.MemorySpace.VMEM)
    out = pl.pallas_call(
        _build_fused_kernel(num_layer, S, B, Din, H, O_pad),
        out_shape=jax.ShapeDtypeStruct((num_layer * B, O_pad), jnp.float32),
        in_specs=[vmem_spec] * len(args),
        out_specs=vmem_spec,
        cost_estimate=pl.CostEstimate(
            flops=flops, transcendentals=0, bytes_accessed=bytes_accessed),
    )(*args)

    # (L*B, O_pad) -> (L, B, O_pad) -> drop pad -> (B, L, O); matches fc(hn.permute(1,0,2)).
    return jnp.transpose(out.reshape(num_layer, B, O_pad)[:, :, :O], (1, 0, 2))


# ----------------------------------------------------------------------------
# Deterministic parameter init (matches PyTorch RNN/Linear uniform(-k, k)), plus the
# kernel-side pre-stacked / pre-padded forms (built once at init, not per call).
# ----------------------------------------------------------------------------
def init_params(key, input_dim, hidden_dim, num_layer, output_dim):
    params = {}
    k = 1.0 / jnp.sqrt(hidden_dim)
    keys = jax.random.split(key, 4 * num_layer + 2)
    ki = 0
    for l in range(num_layer):
        din = input_dim if l == 0 else hidden_dim
        w_ih = jax.random.uniform(keys[ki], (hidden_dim, din), jnp.float32, -k, k); ki += 1
        w_hh = jax.random.uniform(keys[ki], (hidden_dim, hidden_dim), jnp.float32, -k, k); ki += 1
        b_ih = jax.random.uniform(keys[ki], (hidden_dim,), jnp.float32, -k, k); ki += 1
        b_hh = jax.random.uniform(keys[ki], (hidden_dim,), jnp.float32, -k, k); ki += 1
        params[f"w_ih_t_{l}"] = w_ih.T                                    # (din, H)   (reference)
        params[f"w_hh_t_{l}"] = w_hh.T                                    # (H, H)     (reference)
        params[f"b_{l}"] = (b_ih + b_hh).reshape(1, hidden_dim)           # (1, H)
        params[f"w_stack_{l}"] = jnp.concatenate([w_ih.T, w_hh.T], axis=0)  # (din+H, H) (kernel)
    w_fc = jax.random.uniform(keys[ki], (output_dim, hidden_dim), jnp.float32, -k, k); ki += 1
    b_fc = jax.random.uniform(keys[ki], (output_dim,), jnp.float32, -k, k); ki += 1
    params["w_fc_t"] = w_fc.T                                             # (H, O)     (reference)
    params["b_fc"] = b_fc.reshape(1, output_dim)                          # (1, O)     (reference)
    o_pad = _round_up(output_dim, 128)
    params["w_fc_pad"] = jnp.zeros((hidden_dim, o_pad), jnp.float32).at[:, :output_dim].set(w_fc.T)
    params["b_fc_pad"] = jnp.zeros((1, o_pad), jnp.float32).at[:, :output_dim].set(params["b_fc"])
    return params


# Pure-JAX reference for correctness checking.
def rnn_model_ref(x, params, num_layer, hidden_dim):
    B, S, _ = x.shape
    last_hiddens = []
    layer_in = x
    for l in range(num_layer):
        h = jnp.zeros((B, hidden_dim), jnp.float32)
        outs = []
        for t in range(S):
            h = jnp.maximum(
                layer_in[:, t, :] @ params[f"w_ih_t_{l}"]
                + h @ params[f"w_hh_t_{l}"]
                + params[f"b_{l}"],
                0.0,
            )
            outs.append(h)
        layer_in = jnp.stack(outs, axis=1)
        last_hiddens.append(h)
    hn = jnp.stack(last_hiddens, axis=0)
    hn_perm = jnp.transpose(hn, (1, 0, 2))
    return hn_perm @ params["w_fc_t"] + params["b_fc"]


if __name__ == "__main__":
    # Small shapes consistent with the module's forward pass.
    vocabularys = 50      # unused by forward (the embedding is never applied)
    batch = 8
    seq = 8
    input_dim = 16
    hidden_dim = 32
    num_layer = 2
    output_dim = 8

    key = jax.random.PRNGKey(0)
    k_x, k_p = jax.random.split(key)
    x = jax.random.normal(k_x, (batch, seq, input_dim), jnp.float32)
    params = init_params(k_p, input_dim, hidden_dim, num_layer, output_dim)

    pred = rnn_model_forward(x, params, num_layer)
    pred = jax.block_until_ready(pred)

    ref = rnn_model_ref(x, params, num_layer, hidden_dim)
    assert pred.shape == (batch, num_layer, output_dim), pred.shape
    assert jnp.allclose(pred, ref, atol=1e-4, rtol=1e-4), float(jnp.max(jnp.abs(pred - ref)))

    print("KERNEL_OK")
</pallas_src>

<mosaic_0001>
module attributes {stable_mosaic.version = 11 : i64} {
  func.func @kernel(%arg0: memref<8x128xf32, #tpu.memory_space<vmem>>, %arg1: memref<48x32xf32, #tpu.memory_space<vmem>>, %arg2: memref<1x32xf32, #tpu.memory_space<vmem>>, %arg3: memref<64x32xf32, #tpu.memory_space<vmem>>, %arg4: memref<1x32xf32, #tpu.memory_space<vmem>>, %arg5: memref<32x128xf32, #tpu.memory_space<vmem>>, %arg6: memref<1x128xf32, #tpu.memory_space<vmem>>, %arg7: memref<16x128xf32, #tpu.memory_space<vmem>>) attributes {dimension_semantics = [], scalar_prefetch = 0 : i64, scratch_operands = 0 : i64, tpu.core_type = #tpu.core_type<tc>} {
    %c0 = arith.constant 0 : index
    %c0_0 = arith.constant 0 : index
    %0 = vector.load %arg0[%c0, %c0_0] : memref<8x128xf32, #tpu.memory_space<vmem>>, vector<8x128xf32>
    %1 = vector.extract_strided_slice %0 {offsets = [0, 0], sizes = [8, 16], strides = [1, 1]} : vector<8x128xf32> to vector<8x16xf32>
    %2 = vector.extract_strided_slice %0 {offsets = [0, 16], sizes = [8, 16], strides = [1, 1]} : vector<8x128xf32> to vector<8x16xf32>
    %3 = vector.extract_strided_slice %0 {offsets = [0, 32], sizes = [8, 16], strides = [1, 1]} : vector<8x128xf32> to vector<8x16xf32>
    %4 = vector.extract_strided_slice %0 {offsets = [0, 48], sizes = [8, 16], strides = [1, 1]} : vector<8x128xf32> to vector<8x16xf32>
    %5 = vector.extract_strided_slice %0 {offsets = [0, 64], sizes = [8, 16], strides = [1, 1]} : vector<8x128xf32> to vector<8x16xf32>
    %6 = vector.extract_strided_slice %0 {offsets = [0, 80], sizes = [8, 16], strides = [1, 1]} : vector<8x128xf32> to vector<8x16xf32>
    %7 = vector.extract_strided_slice %0 {offsets = [0, 96], sizes = [8, 16], strides = [1, 1]} : vector<8x128xf32> to vector<8x16xf32>
    %8 = vector.extract_strided_slice %0 {offsets = [0, 112], sizes = [8, 16], strides = [1, 1]} : vector<8x128xf32> to vector<8x16xf32>
    %c0_1 = arith.constant 0 : index
    %c0_2 = arith.constant 0 : index
    %9 = vector.load %arg1[%c0_1, %c0_2] : memref<48x32xf32, #tpu.memory_space<vmem>>, vector<48x32xf32>
    %c0_3 = arith.constant 0 : index
    %c0_4 = arith.constant 0 : index
    %10 = vector.load %arg3[%c0_3, %c0_4] : memref<64x32xf32, #tpu.memory_space<vmem>>, vector<64x32xf32>
    %11 = vector.extract_strided_slice %9 {offsets = [0, 0], sizes = [16, 32], strides = [1, 1]} : vector<48x32xf32> to vector<16x32xf32>
    %12 = vector.extract_strided_slice %10 {offsets = [0, 0], sizes = [32, 32], strides = [1, 1]} : vector<64x32xf32> to vector<32x32xf32>
    %c0_5 = arith.constant 0 : index
    %c0_6 = arith.constant 0 : index
    %13 = vector.load %arg2[%c0_5, %c0_6] : memref<1x32xf32, #tpu.memory_space<vmem>>, vector<1x32xf32>
    %14 = vector.shape_cast %13 : vector<1x32xf32> to vector<1x32xf32>
    %15 = vector.broadcast %14 : vector<1x32xf32> to vector<8x32xf32>
    %c0_7 = arith.constant 0 : index
    %c0_8 = arith.constant 0 : index
    %16 = vector.load %arg4[%c0_7, %c0_8] : memref<1x32xf32, #tpu.memory_space<vmem>>, vector<1x32xf32>
    %17 = vector.shape_cast %16 : vector<1x32xf32> to vector<1x32xf32>
    %18 = vector.broadcast %17 : vector<1x32xf32> to vector<8x32xf32>
    %c0_9 = arith.constant 0 : index
    %c0_10 = arith.constant 0 : index
    %19 = vector.load %arg5[%c0_9, %c0_10] : memref<32x128xf32, #tpu.memory_space<vmem>>, vector<32x128xf32>
    %c0_11 = arith.constant 0 : index
    %c0_12 = arith.constant 0 : index
    %20 = vector.load %arg6[%c0_11, %c0_12] : memref<1x128xf32, #tpu.memory_space<vmem>>, vector<1x128xf32>
    %21 = vector.shape_cast %20 : vector<1x128xf32> to vector<1x128xf32>
    %22 = vector.broadcast %21 : vector<1x128xf32> to vector<8x128xf32>
    %cst = arith.constant dense<0.000000e+00> : vector<8x32xf32>
    %23 = tpu.matmul %1, %11, %cst {dimension_numbers = #tpu.dot_dimension_numbers<[1], [0], [0], [1], [0, 0, 1, 1], [], []>} : vector<8x16xf32>, vector<16x32xf32>, vector<8x32xf32> -> vector<8x32xf32>
    %24 = arith.addf %23, %15 : vector<8x32xf32>
    %cst_13 = arith.constant 0.000000e+00 : f32
    %25 = vector.broadcast %cst_13 : f32 to vector<8x32xf32>
    %26 = arith.maximumf %24, %25 : vector<8x32xf32>
    %cst_14 = arith.constant dense<0.000000e+00> : vector<8x32xf32>
    %27 = tpu.matmul %26, %12, %cst_14 {dimension_numbers = #tpu.dot_dimension_numbers<[1], [0], [0], [1], [0, 0, 1, 1], [], []>} : vector<8x32xf32>, vector<32x32xf32>, vector<8x32xf32> -> vector<8x32xf32>
    %28 = arith.addf %27, %18 : vector<8x32xf32>
    %cst_15 = arith.constant 0.000000e+00 : f32
    %29 = vector.broadcast %cst_15 : f32 to vector<8x32xf32>
    %30 = arith.maximumf %28, %29 : vector<8x32xf32>
    %31 = tpu.concatenate %2, %26 in 1 : vector<8x16xf32>, vector<8x32xf32> -> vector<8x48xf32>
    %cst_16 = arith.constant dense<0.000000e+00> : vector<8x32xf32>
    %32 = tpu.matmul %31, %9, %cst_16 {dimension_numbers = #tpu.dot_dimension_numbers<[1], [0], [0], [1], [0, 0, 1, 1], [], []>} : vector<8x48xf32>, vector<48x32xf32>, vector<8x32xf32> -> vector<8x32xf32>
    %33 = arith.addf %32, %15 : vector<8x32xf32>
    %cst_17 = arith.constant 0.000000e+00 : f32
    %34 = vector.broadcast %cst_17 : f32 to vector<8x32xf32>
    %35 = arith.maximumf %33, %34 : vector<8x32xf32>
    %36 = tpu.concatenate %35, %30 in 1 : vector<8x32xf32>, vector<8x32xf32> -> vector<8x64xf32>
    %cst_18 = arith.constant dense<0.000000e+00> : vector<8x32xf32>
    %37 = tpu.matmul %36, %10, %cst_18 {dimension_numbers = #tpu.dot_dimension_numbers<[1], [0], [0], [1], [0, 0, 1, 1], [], []>} : vector<8x64xf32>, vector<64x32xf32>, vector<8x32xf32> -> vector<8x32xf32>
    %38 = arith.addf %37, %18 : vector<8x32xf32>
    %cst_19 = arith.constant 0.000000e+00 : f32
    %39 = vector.broadcast %cst_19 : f32 to vector<8x32xf32>
    %40 = arith.maximumf %38, %39 : vector<8x32xf32>
    %41 = tpu.concatenate %3, %35 in 1 : vector<8x16xf32>, vector<8x32xf32> -> vector<8x48xf32>
    %cst_20 = arith.constant dense<0.000000e+00> : vector<8x32xf32>
    %42 = tpu.matmul %41, %9, %cst_20 {dimension_numbers = #tpu.dot_dimension_numbers<[1], [0], [0], [1], [0, 0, 1, 1], [], []>} : vector<8x48xf32>, vector<48x32xf32>, vector<8x32xf32> -> vector<8x32xf32>
    %43 = arith.addf %42, %15 : vector<8x32xf32>
    %cst_21 = arith.constant 0.000000e+00 : f32
    %44 = vector.broadcast %cst_21 : f32 to vector<8x32xf32>
    %45 = arith.maximumf %43, %44 : vector<8x32xf32>
    %46 = tpu.concatenate %45, %40 in 1 : vector<8x32xf32>, vector<8x32xf32> -> vector<8x64xf32>
    %cst_22 = arith.constant dense<0.000000e+00> : vector<8x32xf32>
    %47 = tpu.matmul %46, %10, %cst_22 {dimension_numbers = #tpu.dot_dimension_numbers<[1], [0], [0], [1], [0, 0, 1, 1], [], []>} : vector<8x64xf32>, vector<64x32xf32>, vector<8x32xf32> -> vector<8x32xf32>
    %48 = arith.addf %47, %18 : vector<8x32xf32>
    %cst_23 = arith.constant 0.000000e+00 : f32
    %49 = vector.broadcast %cst_23 : f32 to vector<8x32xf32>
    %50 = arith.maximumf %48, %49 : vector<8x32xf32>
    %51 = tpu.concatenate %4, %45 in 1 : vector<8x16xf32>, vector<8x32xf32> -> vector<8x48xf32>
    %cst_24 = arith.constant dense<0.000000e+00> : vector<8x32xf32>
    %52 = tpu.matmul %51, %9, %cst_24 {dimension_numbers = #tpu.dot_dimension_numbers<[1], [0], [0], [1], [0, 0, 1, 1], [], []>} : vector<8x48xf32>, vector<48x32xf32>, vector<8x32xf32> -> vector<8x32xf32>
    %53 = arith.addf %52, %15 : vector<8x32xf32>
    %cst_25 = arith.constant 0.000000e+00 : f32
    %54 = vector.broadcast %cst_25 : f32 to vector<8x32xf32>
    %55 = arith.maximumf %53, %54 : vector<8x32xf32>
    %56 = tpu.concatenate %55, %50 in 1 : vector<8x32xf32>, vector<8x32xf32> -> vector<8x64xf32>
    %cst_26 = arith.constant dense<0.000000e+00> : vector<8x32xf32>
    %57 = tpu.matmul %56, %10, %cst_26 {dimension_numbers = #tpu.dot_dimension_numbers<[1], [0], [0], [1], [0, 0, 1, 1], [], []>} : vector<8x64xf32>, vector<64x32xf32>, vector<8x32xf32> -> vector<8x32xf32>
    %58 = arith.addf %57, %18 : vector<8x32xf32>
    %cst_27 = arith.constant 0.000000e+00 : f32
    %59 = vector.broadcast %cst_27 : f32 to vector<8x32xf32>
    %60 = arith.maximumf %58, %59 : vector<8x32xf32>
    %61 = tpu.concatenate %5, %55 in 1 : vector<8x16xf32>, vector<8x32xf32> -> vector<8x48xf32>
    %cst_28 = arith.constant dense<0.000000e+00> : vector<8x32xf32>
    %62 = tpu.matmul %61, %9, %cst_28 {dimension_numbers = #tpu.dot_dimension_numbers<[1], [0], [0], [1], [0, 0, 1, 1], [], []>} : vector<8x48xf32>, vector<48x32xf32>, vector<8x32xf32> -> vector<8x32xf32>
    %63 = arith.addf %62, %15 : vector<8x32xf32>
    %cst_29 = arith.constant 0.000000e+00 : f32
    %64 = vector.broadcast %cst_29 : f32 to vector<8x32xf32>
    %65 = arith.maximumf %63, %64 : vector<8x32xf32>
    %66 = tpu.concatenate %65, %60 in 1 : vector<8x32xf32>, vector<8x32xf32> -> vector<8x64xf32>
    %cst_30 = arith.constant dense<0.000000e+00> : vector<8x32xf32>
    %67 = tpu.matmul %66, %10, %cst_30 {dimension_numbers = #tpu.dot_dimension_numbers<[1], [0], [0], [1], [0, 0, 1, 1], [], []>} : vector<8x64xf32>, vector<64x32xf32>, vector<8x32xf32> -> vector<8x32xf32>
    %68 = arith.addf %67, %18 : vector<8x32xf32>
    %cst_31 = arith.constant 0.000000e+00 : f32
    %69 = vector.broadcast %cst_31 : f32 to vector<8x32xf32>
    %70 = arith.maximumf %68, %69 : vector<8x32xf32>
    %71 = tpu.concatenate %6, %65 in 1 : vector<8x16xf32>, vector<8x32xf32> -> vector<8x48xf32>
    %cst_32 = arith.constant dense<0.000000e+00> : vector<8x32xf32>
    %72 = tpu.matmul %71, %9, %cst_32 {dimension_numbers = #tpu.dot_dimension_numbers<[1], [0], [0], [1], [0, 0, 1, 1], [], []>} : vector<8x48xf32>, vector<48x32xf32>, vector<8x32xf32> -> vector<8x32xf32>
    %73 = arith.addf %72, %15 : vector<8x32xf32>
    %cst_33 = arith.constant 0.000000e+00 : f32
    %74 = vector.broadcast %cst_33 : f32 to vector<8x32xf32>
    %75 = arith.maximumf %73, %74 : vector<8x32xf32>
    %76 = tpu.concatenate %75, %70 in 1 : vector<8x32xf32>, vector<8x32xf32> -> vector<8x64xf32>
    %cst_34 = arith.constant dense<0.000000e+00> : vector<8x32xf32>
    %77 = tpu.matmul %76, %10, %cst_34 {dimension_numbers = #tpu.dot_dimension_numbers<[1], [0], [0], [1], [0, 0, 1, 1], [], []>} : vector<8x64xf32>, vector<64x32xf32>, vector<8x32xf32> -> vector<8x32xf32>
    %78 = arith.addf %77, %18 : vector<8x32xf32>
    %cst_35 = arith.constant 0.000000e+00 : f32
    %79 = vector.broadcast %cst_35 : f32 to vector<8x32xf32>
    %80 = arith.maximumf %78, %79 : vector<8x32xf32>
    %81 = tpu.concatenate %7, %75 in 1 : vector<8x16xf32>, vector<8x32xf32> -> vector<8x48xf32>
    %cst_36 = arith.constant dense<0.000000e+00> : vector<8x32xf32>
    %82 = tpu.matmul %81, %9, %cst_36 {dimension_numbers = #tpu.dot_dimension_numbers<[1], [0], [0], [1], [0, 0, 1, 1], [], []>} : vector<8x48xf32>, vector<48x32xf32>, vector<8x32xf32> -> vector<8x32xf32>
    %83 = arith.addf %82, %15 : vector<8x32xf32>
    %cst_37 = arith.constant 0.000000e+00 : f32
    %84 = vector.broadcast %cst_37 : f32 to vector<8x32xf32>
    %85 = arith.maximumf %83, %84 : vector<8x32xf32>
    %86 = tpu.concatenate %85, %80 in 1 : vector<8x32xf32>, vector<8x32xf32> -> vector<8x64xf32>
    %cst_38 = arith.constant dense<0.000000e+00> : vector<8x32xf32>
    %87 = tpu.matmul %86, %10, %cst_38 {dimension_numbers = #tpu.dot_dimension_numbers<[1], [0], [0], [1], [0, 0, 1, 1], [], []>} : vector<8x64xf32>, vector<64x32xf32>, vector<8x32xf32> -> vector<8x32xf32>
    %88 = arith.addf %87, %18 : vector<8x32xf32>
    %cst_39 = arith.constant 0.000000e+00 : f32
    %89 = vector.broadcast %cst_39 : f32 to vector<8x32xf32>
    %90 = arith.maximumf %88, %89 : vector<8x32xf32>
    %91 = tpu.concatenate %8, %85 in 1 : vector<8x16xf32>, vector<8x32xf32> -> vector<8x48xf32>
    %cst_40 = arith.constant dense<0.000000e+00> : vector<8x32xf32>
    %92 = tpu.matmul %91, %9, %cst_40 {dimension_numbers = #tpu.dot_dimension_numbers<[1], [0], [0], [1], [0, 0, 1, 1], [], []>} : vector<8x48xf32>, vector<48x32xf32>, vector<8x32xf32> -> vector<8x32xf32>
    %93 = arith.addf %92, %15 : vector<8x32xf32>
    %cst_41 = arith.constant 0.000000e+00 : f32
    %94 = vector.broadcast %cst_41 : f32 to vector<8x32xf32>
    %95 = arith.maximumf %93, %94 : vector<8x32xf32>
    %cst_42 = arith.constant dense<0.000000e+00> : vector<8x128xf32>
    %96 = tpu.matmul %95, %19, %cst_42 {dimension_numbers = #tpu.dot_dimension_numbers<[1], [0], [0], [1], [0, 0, 1, 1], [], []>} : vector<8x32xf32>, vector<32x128xf32>, vector<8x128xf32> -> vector<8x128xf32>
    %97 = arith.addf %96, %22 : vector<8x128xf32>
    %c0_43 = arith.constant 0 : index
    %c0_44 = arith.constant 0 : index
    %98 = vector.load %arg7[%c0_43, %c0_44] : memref<16x128xf32, #tpu.memory_space<vmem>>, vector<8x128xf32>
    tpu.vector_store %arg7[%c0_43, %c0_44], %97 {strides = array<i32>} : memref<16x128xf32, #tpu.memory_space<vmem>>, vector<8x128xf32>,
    %99 = tpu.concatenate %95, %90 in 1 : vector<8x32xf32>, vector<8x32xf32> -> vector<8x64xf32>
    %cst_45 = arith.constant dense<0.000000e+00> : vector<8x32xf32>
    %100 = tpu.matmul %99, %10, %cst_45 {dimension_numbers = #tpu.dot_dimension_numbers<[1], [0], [0], [1], [0, 0, 1, 1], [], []>} : vector<8x64xf32>, vector<64x32xf32>, vector<8x32xf32> -> vector<8x32xf32>
    %101 = arith.addf %100, %18 : vector<8x32xf32>
    %cst_46 = arith.constant 0.000000e+00 : f32
    %102 = vector.broadcast %cst_46 : f32 to vector<8x32xf32>
    %103 = arith.maximumf %101, %102 : vector<8x32xf32>
    %cst_47 = arith.constant dense<0.000000e+00> : vector<8x128xf32>
    %104 = tpu.matmul %103, %19, %cst_47 {dimension_numbers = #tpu.dot_dimension_numbers<[1], [0], [0], [1], [0, 0, 1, 1], [], []>} : vector<8x32xf32>, vector<32x128xf32>, vector<8x128xf32> -> vector<8x128xf32>
    %105 = arith.addf %104, %22 : vector<8x128xf32>
    %c8 = arith.constant 8 : index
    %c0_48 = arith.constant 0 : index
    %106 = vector.load %arg7[%c8, %c0_48] : memref<16x128xf32, #tpu.memory_space<vmem>>, vector<8x128xf32>
    tpu.vector_store %arg7[%c8, %c0_48], %105 {strides = array<i32>} : memref<16x128xf32, #tpu.memory_space<vmem>>, vector<8x128xf32>,
    return
  }
}

</mosaic_0001>

<bundles_post_ra>
// kernel: tpu_custom_call.1
= control target key start
LH: loop header
LB: loop body
LE: loop exit
PB: predicated region body
PF: predicated region fallthrough
CT: control target
= control target key end

     0   :  { %v2143_v2 = vmov 0.0|0.0   ;;  %vm2144_vm0 = vmmov 0   ;;  %v2145_v4 = vmov 0.0   ;;  %s2510_s0 = inlined_call_operand.vmem [shape: f32[8,128], index: 0, kind: input, shape index: {}]   ;;  %s2511_s1 = inlined_call_operand.vmem [shape: f32[48,32], index: 1, kind: input, shape index: {}]   ;;  %s2512_s2 = inlined_call_operand.vmem [shape: f32[1,32], index: 2, kind: input, shape index: {}]   ;;  %s2513_s3 = inlined_call_operand.vmem [shape: f32[64,32], index: 3, kind: input, shape index: {}]   ;;  %s2514_s4 = inlined_call_operand.vmem [shape: f32[1,32], index: 4, kind: input, shape index: {}]   ;;  %s2515_s5 = inlined_call_operand.vmem [shape: f32[32,128], index: 5, kind: input, shape index: {}]   ;;  %s2516_s6 = inlined_call_operand.vmem [shape: f32[1,128], index: 6, kind: input, shape index: {}]   ;;  %s2517_s7 = inlined_call_operand.hbm [shape: f32[16,128], index: 7, kind: output, shape index: {}]  }
   0x1   :  { %v28_v0 = vld [vmem:[%s2511_s1] sm:$0xff]  ;;  %v29_v1 = vld [vmem:[%s2511_s1 + $0x8] sm:$0xff]  ;;  %1938 = vmatprep.subr.bf16.mxu0 %v2143_v2  ;;  %1664 = vmatprep.mubr.msk.f32.mxu0 %vm2144_vm0, %v2145_v4 }
   0x2   :  { %v2203_v3 = vpack.c.bf16 %v29_v1, %v28_v0  ;;  %v34_v5 = vld [vmem:[%s2513_s3] sm:$0xff]  ;;  %v35_v6 = vld [vmem:[%s2513_s3 + $0x8] sm:$0xff]  ;;  %1941 = vmatprep.subr.bf16.mxu1 %v2143_v2  ;;  %1675 = vmatprep.mubr.msk.f32.mxu1 %vm2144_vm0, %v2145_v4 }
   0x3   :  { %v2214_v7 = vpack.c.bf16 %v35_v6, %v34_v5 }
   0x4   :  { %12 = vsyncpa [#allocation3], 0  ;;  %1940 = vmatpush3.bf16.msra.mxu0 %v2203_v3  ;;  %v2222_v8 = vld [vmem:[%s2510_s0] sm:$0xff]  ;;  %vm67_vm1 = vcmask 130048   ;;  %v36_v9 = vld [vmem:[%s2513_s3 + $0x10] sm:$0xff]  ;;  %s2146_s14 = smov 112  }
   0x5   :  { %1943 = vmatpush3.bf16.msra.mxu1 %v2214_v7  ;;  %1947 = vmatprep.subr.bf16.mxu0 %v2143_v2  ;;  %v37_v10 = vld [vmem:[%s2513_s3 + $0x18] sm:$0xff]  ;;  %v30_v12 = vld [vmem:[%s2511_s1 + $0x10] sm:$0xff]  ;;  %v32_v14 = vld [vmem:[%s2511_s1 + $0x20] sm:$0xff]  ;;  %vm142_vm2 = vcmask 261120   ;;  %vm224_vm3 = vcmask 392192   ;;  %s2148_s11 = smov 32  }
   0x6   :  { %1944 = vmatprep.subr.bf16.mxu1 %v2143_v2  ;;  %v2239_v11 = vpack.c.bf16 %v37_v10, %v36_v9  ;;  %217 = vrot.lane.b32.xlu0 %v2222_v8, %s2146_s14  ;;  %v31_v13 = vld [vmem:[%s2511_s1 + $0x18] sm:$0xff]  ;;  %v33_v16 = vld [vmem:[%s2511_s1 + $0x28] sm:$0xff]  ;;  %v2267_v18 = vld [vmem:[%s2512_s2] ss:$0 sm:$0xff]  ;;  %s2147_s1 = smov 16   ;;  %vm304_vm4 = vcmask 523264  }
   0x7   :  { %1665 = vmatmul.mubr.msk.f32.vlgmr.msra.gmra.mrb[0].mxu0 %vm67_vm1, %v2222_v8  ;;  %v2253_v15 = vpack.c.bf16 %v31_v13, %v30_v12  ;;  %v2259_v17 = vpack.c.bf16 %v33_v16, %v32_v14  ;;  %v38_v23 = vld [vmem:[%s2513_s3 + $0x20] sm:$0xff]  ;;  %v39_v24 = vld [vmem:[%s2513_s3 + $0x28] sm:$0xff]  ;;  %v40_v29 = vld [vmem:[%s2513_s3 + $0x30] sm:$0xff]  ;;  %s2151_s0 = smov 64   ;;  %s2152_s12 = smov 48  }
   0x8   :  { %1949 = vmatpush3.bf16.msra.mxu0 %v2203_v3  ;;  %1690 = vmatprep.mubr.msk.f32.mxu0 %vm2144_vm0, %v2145_v4  ;;  %v2284_v25 = vpack.c.bf16 %v39_v24, %v38_v23  ;;  %v41_v30 = vld [vmem:[%s2513_s3 + $0x38] sm:$0xff]  ;;  %v2311_v32 = vld [vmem:[%s2514_s4] ss:$0 sm:$0xff]  ;;  %s2149_s3 = smov 96   ;;  %s2150_s4 = smov 80  }
   0x9   :  { %1950 = vmatprep.subr.bf16.mxu0 %v2143_v2  ;;  %1946 = vmatpush3.bf16.msra.mxu1 %v2239_v11  ;;  %v2304_v31 = vpack.c.bf16 %v41_v30, %v40_v29  ;;  %s2153_s22 = smov [#allocation2]  }
   0xa   :  { %1956 = vmatprep.subr.bf16.mxu1 %v2143_v2  ;;  %s1498_s23 = sshll.u32 %s2153_s22, 4  ;;  %s1499_s23 = int_to_ptr.vmem [resolvable:$true] %s1498_s23 }
   0xb   :  { %s2119_s24 = scalar_lea.vmem %s1499_s23, 256  ;;  %p2124_p1 = scmp.lt.s32.totalorder %s1499_s23, %s1499_s23 }
   0xc   :  { %1952 = vmatpush3.bf16.msra.mxu0 %v2253_v15  ;;  %p2120_p0 = scmp.ne.s32.totalorder %s1499_s23, %s2119_s24  ;;  %p2125_p2 = scmp.lt.s32.totalorder %s2119_s24, %s2119_s24 }
   0xd   :  { %1953 = vmatprep.subr.bf16.mxu0 %v2143_v2 }
   0xe   :  { %p2126_p3 = por %p2125_p2, %p2124_p1 }
  0x10   :  { %1955 = vmatpush3.bf16.msra.mxu0 %v2259_v17  ;;  %p2127_p4 = pnand %p2126_p3, %p2120_p0 }
  0x11   :  { %1968 = vmatprep.subr.bf16.mxu0 %v2143_v2 }
  0x78   :  { %v218_v26 = vpop.permute.xlu0 %217 }
  0xda   :  { %v137_v19 = vpop.f32.mrb[0].mxu0 }
  0xdb   :  { %v138_v20 = vadd.f32 %v2267_v18, %v137_v19  ;;  %v1666_v21 = vpop.f32.mrb[1].mxu0 }
  0xdd   :  { %v141_v22 = vmax.f32 %v138_v20, 0.0 }
  0xdf   :  { %220 = vrot.lane.b32.xlu0 %v141_v22, %s2147_s1  ;;  %1676 = vmatmul.mubr.msk.f32.vlgmr.msra.gmra.mrb[0].mxu1 %vm142_vm2, %v141_v22 }
  0xe0   :  { %1958 = vmatpush3.bf16.msra.mxu1 %v2214_v7  ;;  %1709 = vmatprep.mubr.msk.f32.mxu1 %vm2144_vm0, %v2145_v4 }
  0xe1   :  { %1959 = vmatprep.subr.bf16.mxu1 %v2143_v2 }
  0xe4   :  { %1961 = vmatpush3.bf16.msra.mxu1 %v2239_v11 }
  0xe5   :  { %1962 = vmatprep.subr.bf16.mxu1 %v2143_v2 }
  0xe8   :  { %1964 = vmatpush3.bf16.msra.mxu1 %v2284_v25 }
  0xe9   :  { %1965 = vmatprep.subr.bf16.mxu1 %v2143_v2 }
  0xec   :  { %1967 = vmatpush3.bf16.msra.mxu1 %v2304_v31 }
  0xed   :  { %1977 = vmatprep.subr.bf16.mxu1 %v2143_v2 }
 0x151   :  { %v221_v27 = vpop.permute.xlu0 %220 }
 0x152   :  { %v223_v28 = vsel %vm67_vm1, %v218_v26, %v221_v27 }
 0x153   :  { %1691 = vmatmul.mubr.msk.f32.vlgmr.msra.gmra.mrb[2].mxu0 %vm224_vm3, %v223_v28 }
 0x154   :  { %1970 = vmatpush3.bf16.msra.mxu0 %v2203_v3  ;;  %1724 = vmatprep.mubr.msk.f32.mxu0 %vm2144_vm0, %v2145_v4 }
 0x155   :  { %1971 = vmatprep.subr.bf16.mxu0 %v2143_v2 }
 0x158   :  { %1973 = vmatpush3.bf16.msra.mxu0 %v2253_v15 }
 0x159   :  { %1974 = vmatprep.subr.bf16.mxu0 %v2143_v2 }
 0x15c   :  { %1976 = vmatpush3.bf16.msra.mxu0 %v2259_v17 }
 0x15d   :  { %1989 = vmatprep.subr.bf16.mxu0 %v2143_v2 }
 0x1b2   :  { %v212_v33 = vpop.f32.mrb[0].mxu1 }
 0x1b3   :  { %v213_v34 = vadd.f32 %v2311_v32, %v212_v33  ;;  %v1677_v35 = vpop.f32.mrb[1].mxu1 }
 0x1b5   :  { %v216_v36 = vmax.f32 %v213_v34, 0.0 }
 0x1b7   :  { %300 = vrot.lane.b32.xlu1 %v216_v36, %s2148_s11 }
 0x1bb   :  { %379 = vrot.lane.b32.xlu1 %v2222_v8, %s2149_s3 }
 0x226   :  { %v294_v37 = vpop.f32.mrb[2].mxu0 }
 0x227   :  { %v295_v38 = vadd.f32 %v2267_v18, %v294_v37  ;;  %v1692_v39 = vpop.f32.mrb[3].mxu0 }
 0x229   :  { %v298_v40 = vmax.f32 %v295_v38, 0.0  ;;  %v301_v41 = vpop.permute.xlu1 %300 }
 0x22b   :  { %v303_v42 = vsel %vm142_vm2, %v298_v40, %v301_v41  ;;  %383 = vrot.lane.b32.xlu0 %v298_v40, %s2147_s1 }
 0x22c   :  { %1710 = vmatmul.mubr.msk.f32.vlgmr.msra.gmra.mrb[2].mxu1 %vm304_vm4, %v303_v42 }
 0x22d   :  { %1979 = vmatpush3.bf16.msra.mxu1 %v2214_v7  ;;  %1743 = vmatprep.mubr.msk.f32.mxu1 %vm2144_vm0, %v2145_v4  ;;  %v380_v43 = vpop.permute.xlu1 %379 }
 0x22e   :  { %1980 = vmatprep.subr.bf16.mxu1 %v2143_v2 }
 0x22f   :  { %540 = vrot.lane.b32.xlu0 %v2222_v8, %s2150_s4 }
 0x231   :  { %1982 = vmatpush3.bf16.msra.mxu1 %v2239_v11 }
 0x232   :  { %1983 = vmatprep.subr.bf16.mxu1 %v2143_v2 }
 0x235   :  { %1985 = vmatpush3.bf16.msra.mxu1 %v2284_v25 }
 0x236   :  { %1986 = vmatprep.subr.bf16.mxu1 %v2143_v2 }
 0x239   :  { %1988 = vmatpush3.bf16.msra.mxu1 %v2304_v31 }
 0x23a   :  { %2010 = vmatprep.subr.bf16.mxu1 %v2143_v2 }
 0x29d   :  { %v384_v44 = vpop.permute.xlu0 %383 }
 0x29e   :  { %v386_v45 = vsel %vm67_vm1, %v380_v43, %v384_v44 }
 0x29f   :  { %1725 = vmatmul.mubr.msk.f32.vlgmr.msra.gmra.mrb[4].mxu0 %vm224_vm3, %v386_v45 }
 0x2a0   :  { %1991 = vmatpush3.bf16.msra.mxu0 %v2203_v3  ;;  %1758 = vmatprep.mubr.msk.f32.mxu0 %vm2144_vm0, %v2145_v4 }
 0x2a1   :  { %1992 = vmatprep.subr.bf16.mxu0 %v2143_v2  ;;  %v541_v56 = vpop.permute.xlu0 %540 }
 0x2a4   :  { %1994 = vmatpush3.bf16.msra.mxu0 %v2253_v15 }
 0x2a5   :  { %1995 = vmatprep.subr.bf16.mxu0 %v2143_v2 }
 0x2a8   :  { %1997 = vmatpush3.bf16.msra.mxu0 %v2259_v17 }
 0x2a9   :  { %1998 = vmatprep.subr.bf16.mxu0 %v2143_v2 }
 0x2ff   :  { %v374_v46 = vpop.f32.mrb[2].mxu1 }
 0x300   :  { %v375_v47 = vadd.f32 %v2311_v32, %v374_v46  ;;  %v1711_v48 = vpop.f32.mrb[3].mxu1 }
 0x302   :  { %v378_v49 = vmax.f32 %v375_v47, 0.0 }
 0x304   :  { %462 = vrot.lane.b32.xlu1 %v378_v49, %s2148_s11 }
 0x372   :  { %v456_v50 = vpop.f32.mrb[4].mxu0 }
 0x373   :  { %v457_v51 = vadd.f32 %v2267_v18, %v456_v50  ;;  %v1726_v52 = vpop.f32.mrb[5].mxu0 }
 0x374   :  { %v56_v52 = vld [vmem:[%s2515_s5] sm:$0xff] }
 0x375   :  { %v460_v53 = vmax.f32 %v457_v51, 0.0 }
 0x376   :  { %v463_v54 = vpop.permute.xlu1 %462 }
 0x377   :  { %v465_v55 = vsel %vm142_vm2, %v460_v53, %v463_v54  ;;  %544 = vrot.lane.b32.xlu1 %v460_v53, %s2147_s1 }
 0x378   :  { %1744 = vmatmul.mubr.msk.f32.vlgmr.msra.gmra.mrb[4].mxu1 %vm304_vm4, %v465_v55 }
 0x379   :  { %2012 = vmatpush3.bf16.msra.mxu1 %v2203_v3  ;;  %1792 = vmatprep.mubr.msk.f32.mxu1 %vm2144_vm0, %v2145_v4 }
 0x37a   :  { %2013 = vmatprep.subr.bf16.mxu1 %v2143_v2 }
 0x37b   :  { %701 = vrot.lane.b32.xlu1 %v2222_v8, %s2151_s0 }
 0x37d   :  { %2015 = vmatpush3.bf16.msra.mxu1 %v2253_v15 }
 0x37e   :  { %2016 = vmatprep.subr.bf16.mxu1 %v2143_v2 }
 0x381   :  { %2018 = vmatpush3.bf16.msra.mxu1 %v2259_v17 }
 0x382   :  { %2019 = vmatprep.subr.bf16.mxu1 %v2143_v2 }
 0x3e9   :  { %v545_v57 = vpop.permute.xlu1 %544 }
 0x3ea   :  { %v547_v58 = vsel %vm67_vm1, %v541_v56, %v545_v57 }
 0x3eb   :  { %1759 = vmatmul.mubr.msk.f32.vlgmr.msra.gmra.mrb[6].mxu0 %vm224_vm3, %v547_v58 }
 0x3ec   :  { %2000 = vmatpush3.bf16.msra.mxu0 %v2214_v7  ;;  %1777 = vmatprep.mubr.msk.f32.mxu0 %vm2144_vm0, %v2145_v4 }
 0x3ed   :  { %2001 = vmatprep.subr.bf16.mxu0 %v2143_v2  ;;  %v702_v10 = vpop.permute.xlu1 %701 }
 0x3f0   :  { %2003 = vmatpush3.bf16.msra.mxu0 %v2239_v11 }
 0x3f1   :  { %2004 = vmatprep.subr.bf16.mxu0 %v2143_v2 }
 0x3f4   :  { %2006 = vmatpush3.bf16.msra.mxu0 %v2284_v25 }
 0x3f5   :  { %2007 = vmatprep.subr.bf16.mxu0 %v2143_v2 }
 0x3f8   :  { %2009 = vmatpush3.bf16.msra.mxu0 %v2304_v31 }
 0x3f9   :  { %2031 = vmatprep.subr.bf16.mxu0 %v2143_v2 }
 0x44b   :  { %v535_v59 = vpop.f32.mrb[4].mxu1 }
 0x44c   :  { %v536_v60 = vadd.f32 %v2311_v32, %v535_v59  ;;  %v1745_v61 = vpop.f32.mrb[5].mxu1 }
 0x44e   :  { %v539_v62 = vmax.f32 %v536_v60, 0.0 }
 0x450   :  { %623 = vrot.lane.b32.xlu0 %v539_v62, %s2148_s11 }
 0x4be   :  { %v617_v63 = vpop.f32.mrb[6].mxu0 }
 0x4bf   :  { %v618_v0 = vadd.f32 %v2267_v18, %v617_v63  ;;  %v1760_v1 = vpop.f32.mrb[7].mxu0 }
 0x4c1   :  { %v621_v5 = vmax.f32 %v618_v0, 0.0 }
 0x4c2   :  { %v624_v6 = vpop.permute.xlu0 %623 }
 0x4c3   :  { %v626_v9 = vsel %vm142_vm2, %v621_v5, %v624_v6  ;;  %705 = vrot.lane.b32.xlu0 %v621_v5, %s2147_s1 }
 0x4c4   :  { %1778 = vmatmul.mubr.msk.f32.vlgmr.msra.gmra.mrb[8].mxu0 %vm304_vm4, %v626_v9 }
 0x4c5   :  { %2033 = vmatpush3.bf16.msra.mxu0 %v2203_v3  ;;  %1826 = vmatprep.mubr.msk.f32.mxu0 %vm2144_vm0, %v2145_v4 }
 0x4c6   :  { %2034 = vmatprep.subr.bf16.mxu0 %v2143_v2 }
 0x4c7   :  { %862 = vrot.lane.b32.xlu0 %v2222_v8, %s2152_s12 }
 0x4c9   :  { %2036 = vmatpush3.bf16.msra.mxu0 %v2253_v15 }
 0x4ca   :  { %2037 = vmatprep.subr.bf16.mxu0 %v2143_v2 }
 0x4cd   :  { %2039 = vmatpush3.bf16.msra.mxu0 %v2259_v17 }
 0x4ce   :  { %2040 = vmatprep.subr.bf16.mxu0 %v2143_v2 }
 0x535   :  { %v706_v12 = vpop.permute.xlu0 %705 }
 0x536   :  { %v708_v13 = vsel %vm67_vm1, %v702_v10, %v706_v12 }
 0x537   :  { %1793 = vmatmul.mubr.msk.f32.vlgmr.msra.gmra.mrb[6].mxu1 %vm224_vm3, %v708_v13 }
 0x538   :  { %2021 = vmatpush3.bf16.msra.mxu1 %v2214_v7  ;;  %1811 = vmatprep.mubr.msk.f32.mxu1 %vm2144_vm0, %v2145_v4 }
 0x539   :  { %2022 = vmatprep.subr.bf16.mxu1 %v2143_v2  ;;  %v863_v28 = vpop.permute.xlu0 %862 }
 0x53c   :  { %2024 = vmatpush3.bf16.msra.mxu1 %v2239_v11 }
 0x53d   :  { %2025 = vmatprep.subr.bf16.mxu1 %v2143_v2 }
 0x540   :  { %2027 = vmatpush3.bf16.msra.mxu1 %v2284_v25 }
 0x541   :  { %2028 = vmatprep.subr.bf16.mxu1 %v2143_v2 }
 0x544   :  { %2030 = vmatpush3.bf16.msra.mxu1 %v2304_v31 }
 0x545   :  { %2052 = vmatprep.subr.bf16.mxu1 %v2143_v2 }
 0x597   :  { %v696_v14 = vpop.f32.mrb[8].mxu0 }
 0x598   :  { %v697_v16 = vadd.f32 %v2311_v32, %v696_v14  ;;  %v1779_v19 = vpop.f32.mrb[9].mxu0 }
 0x59a   :  { %v700_v20 = vmax.f32 %v697_v16, 0.0 }
 0x59c   :  { %784 = vrot.lane.b32.xlu1 %v700_v20, %s2148_s11 }
 0x60a   :  { %v778_v21 = vpop.f32.mrb[6].mxu1 }
 0x60b   :  { %v779_v22 = vadd.f32 %v2267_v18, %v778_v21  ;;  %v1794_v23 = vpop.f32.mrb[7].mxu1 }
 0x60d   :  { %v782_v24 = vmax.f32 %v779_v22, 0.0 }
 0x60e   :  { %v785_v26 = vpop.permute.xlu1 %784 }
 0x60f   :  { %v787_v27 = vsel %vm142_vm2, %v782_v24, %v785_v26  ;;  %866 = vrot.lane.b32.xlu1 %v782_v24, %s2147_s1 }
 0x610   :  { %1812 = vmatmul.mubr.msk.f32.vlgmr.msra.gmra.mrb[8].mxu1 %vm304_vm4, %v787_v27 }
 0x611   :  { %2054 = vmatpush3.bf16.msra.mxu1 %v2203_v3  ;;  %1860 = vmatprep.mubr.msk.f32.mxu1 %vm2144_vm0, %v2145_v4 }
 0x612   :  { %2055 = vmatprep.subr.bf16.mxu1 %v2143_v2 }
 0x613   :  { %1023 = vrot.lane.b32.xlu1 %v2222_v8, %s2148_s11 }
 0x615   :  { %2057 = vmatpush3.bf16.msra.mxu1 %v2253_v15 }
 0x616   :  { %2058 = vmatprep.subr.bf16.mxu1 %v2143_v2 }
 0x619   :  { %2060 = vmatpush3.bf16.msra.mxu1 %v2259_v17 }
 0x61a   :  { %2061 = vmatprep.subr.bf16.mxu1 %v2143_v2 }
 0x681   :  { %v867_v29 = vpop.permute.xlu1 %866 }
 0x682   :  { %v869_v30 = vsel %vm67_vm1, %v863_v28, %v867_v29 }
 0x683   :  { %1827 = vmatmul.mubr.msk.f32.vlgmr.msra.gmra.mrb[10].mxu0 %vm224_vm3, %v869_v30 }
 0x684   :  { %2042 = vmatpush3.bf16.msra.mxu0 %v2214_v7  ;;  %1845 = vmatprep.mubr.msk.f32.mxu0 %vm2144_vm0, %v2145_v4 }
 0x685   :  { %2043 = vmatprep.subr.bf16.mxu0 %v2143_v2  ;;  %v1024_v43 = vpop.permute.xlu1 %1023 }
 0x688   :  { %2045 = vmatpush3.bf16.msra.mxu0 %v2239_v11 }
 0x689   :  { %2046 = vmatprep.subr.bf16.mxu0 %v2143_v2 }
 0x68c   :  { %2048 = vmatpush3.bf16.msra.mxu0 %v2284_v25 }
 0x68d   :  { %2049 = vmatprep.subr.bf16.mxu0 %v2143_v2 }
 0x690   :  { %2051 = vmatpush3.bf16.msra.mxu0 %v2304_v31 }
 0x691   :  { %2073 = vmatprep.subr.bf16.mxu0 %v2143_v2 }
 0x6e3   :  { %v857_v33 = vpop.f32.mrb[8].mxu1 }
 0x6e4   :  { %v858_v34 = vadd.f32 %v2311_v32, %v857_v33  ;;  %v1813_v35 = vpop.f32.mrb[9].mxu1 }
 0x6e6   :  { %v861_v36 = vmax.f32 %v858_v34, 0.0 }
 0x6e8   :  { %945 = vrot.lane.b32.xlu0 %v861_v36, %s2148_s11 }
 0x756   :  { %v939_v37 = vpop.f32.mrb[10].mxu0 }
 0x757   :  { %v940_v38 = vadd.f32 %v2267_v18, %v939_v37  ;;  %v1828_v39 = vpop.f32.mrb[11].mxu0 }
 0x759   :  { %v943_v40 = vmax.f32 %v940_v38, 0.0 }
 0x75a   :  { %v946_v41 = vpop.permute.xlu0 %945 }
 0x75b   :  { %v948_v42 = vsel %vm142_vm2, %v943_v40, %v946_v41  ;;  %1027 = vrot.lane.b32.xlu0 %v943_v40, %s2147_s1 }
 0x75c   :  { %1846 = vmatmul.mubr.msk.f32.vlgmr.msra.gmra.mrb[12].mxu0 %vm304_vm4, %v948_v42 }
 0x75d   :  { %2075 = vmatpush3.bf16.msra.mxu0 %v2203_v3  ;;  %1894 = vmatprep.mubr.msk.f32.mxu0 %vm2144_vm0, %v2145_v4 }
 0x75e   :  { %2076 = vmatprep.subr.bf16.mxu0 %v2143_v2 }
 0x75f   :  { %1184 = vrot.lane.b32.xlu0 %v2222_v8, %s2147_s1 }
 0x761   :  { %2078 = vmatpush3.bf16.msra.mxu0 %v2253_v15 }
 0x762   :  { %2079 = vmatprep.subr.bf16.mxu0 %v2143_v2 }
 0x765   :  { %2081 = vmatpush3.bf16.msra.mxu0 %v2259_v17 }
 0x766   :  { %2082 = vmatprep.subr.bf16.mxu0 %v2143_v2 }
 0x7cd   :  { %v1028_v44 = vpop.permute.xlu0 %1027 }
 0x7ce   :  { %v1030_v3 = vsel %vm67_vm1, %v1024_v43, %v1028_v44 }
 0x7cf   :  { %1861 = vmatmul.mubr.msk.f32.vlgmr.msra.gmra.mrb[10].mxu1 %vm224_vm3, %v1030_v3 }
 0x7d0   :  { %2063 = vmatpush3.bf16.msra.mxu1 %v2214_v7  ;;  %1879 = vmatprep.mubr.msk.f32.mxu1 %vm2144_vm0, %v2145_v4 }
 0x7d1   :  { %2064 = vmatprep.subr.bf16.mxu1 %v2143_v2  ;;  %v1185_v53 = vpop.permute.xlu0 %1184 }
 0x7d4   :  { %2066 = vmatpush3.bf16.msra.mxu1 %v2239_v11 }
 0x7d5   :  { %2067 = vmatprep.subr.bf16.mxu1 %v2143_v2 }
 0x7d8   :  { %2069 = vmatpush3.bf16.msra.mxu1 %v2284_v25 }
 0x7d9   :  { %2070 = vmatprep.subr.bf16.mxu1 %v2143_v2 }
 0x7dc   :  { %2072 = vmatpush3.bf16.msra.mxu1 %v2304_v31 }
 0x7dd   :  { %2088 = vmatprep.subr.bf16.mxu1 %v2143_v2 }
 0x82f   :  { %v1018_v8 = vpop.f32.mrb[12].mxu0 }
 0x830   :  { %v1019_v15 = vadd.f32 %v2311_v32, %v1018_v8  ;;  %v1847_v17 = vpop.f32.mrb[13].mxu0 }
 0x832   :  { %v1022_v45 = vmax.f32 %v1019_v15, 0.0 }
 0x834   :  { %1106 = vrot.lane.b32.xlu1 %v1022_v45, %s2148_s11 }
 0x8a2   :  { %v1100_v46 = vpop.f32.mrb[10].mxu1 }
 0x8a3   :  { %v1101_v47 = vadd.f32 %v2267_v18, %v1100_v46  ;;  %v1862_v48 = vpop.f32.mrb[11].mxu1 }
 0x8a5   :  { %v1104_v49 = vmax.f32 %v1101_v47, 0.0 }
 0x8a6   :  { %v1107_v50 = vpop.permute.xlu1 %1106 }
 0x8a7   :  { %v1109_v51 = vsel %vm142_vm2, %v1104_v49, %v1107_v50  ;;  %1188 = vrot.lane.b32.xlu1 %v1104_v49, %s2147_s1 }
 0x8a8   :  { %1880 = vmatmul.mubr.msk.f32.vlgmr.msra.gmra.mrb[12].mxu1 %vm304_vm4, %v1109_v51 }
 0x8a9   :  { %2090 = vmatpush3.bf16.msra.mxu1 %v2214_v7  ;;  %1924 = vmatprep.mubr.msk.f32.mxu1 %vm2144_vm0, %v2145_v4  ;;  %v57_v7 = vld [vmem:[%s2515_s5 + $0x8] sm:$0xff] }
 0x8aa   :  { %2091 = vmatprep.subr.bf16.mxu1 %v2143_v2  ;;  %v2083_v54 = vpack.c.bf16 %v57_v7, %v56_v52 }
 0x8ad   :  { %2093 = vmatpush3.bf16.msra.mxu1 %v2239_v11 }
 0x8ae   :  { %2094 = vmatprep.subr.bf16.mxu1 %v2143_v2 }
 0x8b1   :  { %2096 = vmatpush3.bf16.msra.mxu1 %v2284_v25  ;;  %v58_v25 = vld [vmem:[%s2515_s5 + $0x10] sm:$0xff] }
 0x8b2   :  { %2097 = vmatprep.subr.bf16.mxu1 %v2143_v2 }
 0x8b5   :  { %2099 = vmatpush3.bf16.msra.mxu1 %v2304_v31  ;;  %v59_v31 = vld [vmem:[%s2515_s5 + $0x18] sm:$0xff] }
 0x8b6   :  { %v2086_v56 = vpack.c.bf16 %v59_v31, %v58_v25 }
 0x919   :  { %v1189_v55 = vpop.permute.xlu1 %1188 }
 0x91a   :  { %v1191_v11 = vsel %vm67_vm1, %v1185_v53, %v1189_v55 }
 0x91b   :  { %1895 = vmatmul.mubr.msk.f32.vlgmr.msra.gmra.mrb[14].mxu0 %vm224_vm3, %v1191_v11 }
 0x91c   :  { %2084 = vmatpush3.bf16.msra.mxu0 %v2083_v54  ;;  %1905 = vmatprep.mubr.msk.f32.mxu0 %vm2144_vm0, %v2145_v4 }
 0x91d   :  { %2085 = vmatprep.subr.bf16.mxu0 %v2143_v2 }
 0x920   :  { %2087 = vmatpush3.bf16.msra.mxu0 %v2086_v56 }
 0x921   :  { %2100 = vmatprep.subr.bf16.mxu0 %v2143_v2 }
 0x97b   :  { %v1179_v57 = vpop.f32.mrb[12].mxu1 }
 0x97c   :  { %v1180_v58 = vadd.f32 %v2311_v32, %v1179_v57  ;;  %v1881_v59 = vpop.f32.mrb[13].mxu1 }
 0x97e   :  { %v1183_v60 = vmax.f32 %v1180_v58, 0.0 }
 0x980   :  { %1341 = vrot.lane.b32.xlu0 %v1183_v60, %s2148_s11 }
 0x9ee   :  { %v1261_v61 = vpop.f32.mrb[14].mxu0 }
 0x9ef   :  { %v1262_v62 = vadd.f32 %v2267_v18, %v1261_v61  ;;  %v1896_v63 = vpop.f32.mrb[15].mxu0  ;;  %v1511_v18 = vld [vmem:[%s2516_s6] ss:$0 sm:$0xff] }
 0x9f1   :  { %v1265_v0 = vmax.f32 %v1262_v62, 0.0 }
 0x9f2   :  { %v1342_v1 = vpop.permute.xlu0 %1341 }
 0x9f3   :  { %v1344_v5 = vsel %vm142_vm2, %v1265_v0, %v1342_v1  ;;  %1906 = vmatmul.mubr.msk.f32.vlgmr.msra.gmra.mrb[16].mxu0 %vm142_vm2, %v1265_v0 }
 0x9f4   :  { %1925 = vmatmul.mubr.msk.f32.vlgmr.msra.gmra.mrb[14].mxu1 %vm304_vm4, %v1344_v5  ;;  %2102 = vmatpush3.bf16.msra.mxu0 %v2083_v54 }
 0x9f5   :  { %2103 = vmatprep.subr.bf16.mxu0 %v2143_v2  ;;  %1935 = vmatprep.mubr.msk.f32.mxu0 %vm2144_vm0, %v2145_v4 }
 0x9f8   :  { %2105 = vmatpush3.bf16.msra.mxu0 %v2086_v56 }
 0xac6   :  { %v1335_v6 = vpop.f32.mrb[16].mxu0 }
 0xac7   :  { %v1336_v9 = vadd.f32 %v1511_v18, %v1335_v6  ;;  %v1907_v10 = vpop.f32.mrb[17].mxu0  ;;  %v1414_v12 = vpop.f32.mrb[14].mxu1 }
 0xac8   :  { %v1415_v13 = vadd.f32 %v2311_v32, %v1414_v12  ;;  %v1926_v14 = vpop.f32.mrb[15].mxu1 }
 0xac9   :  { %1339 = vst [vmem:[#allocation2] sm:$0xff] %v1336_v9 }
 0xaca   :  { %v1418_v16 = vmax.f32 %v1415_v13, 0.0 }
 0xacc   :  { %1936 = vmatmul.mubr.msk.f32.vlgmr.msra.gmra.mrb[18].mxu0 %vm142_vm2, %v1418_v16 }
 0xb9f   :  { %v1488_v2 = vpop.f32.mrb[18].mxu0 }
 0xba0   :  { %v1489_v4 = vadd.f32 %v1511_v18, %v1488_v2  ;;  %v1937_v19 = vpop.f32.mrb[19].mxu0 }
 0xba2   :  { %1492 = vst [vmem:[#allocation2 + $0x8] sm:$0xff] %v1489_v4 }
 0xba3   :  { %2130 = shalt.err (!%p2127_p4)
}
 0xba4   :  { %s2131_s2 = scalar_lea.hbm %s2517_s7, 256 }
 0xba5   :  { %p2132_p5 = scmp.ne.s32.totalorder %s2517_s7, %s2131_s2  ;;  %p2135_p6 = scmp.lt.u32.totalorder %s2131_s2, %s2517_s7 }
 0xba7   :  { %p2137_p7 = pnand %p2135_p6, %p2132_p5 }
 0xba9   :  { %2140 = shalt.err (!%p2137_p7)
}
 0xbaa   :  { %s2154_s29 = smov 128   ;;  %s2155_s30 = smov 8  }
 0xbab   :  { %1504 = dma.vmem_to_hbm [thread:$0]  %s1499_s23, 256, %s2517_s7, [#allocation3], %s2154_s29, %s2154_s29, %s2155_s30  }
 0xbac   :  { %2141 = dma.done.wait [#allocation3], 256  }
 0xbad   :  { %2142 = vsyncadd [#allocation3], 4294967040 }
 0xbae   :  { %1508 = vsyncpa [#allocation3], 1 }

</bundles_post_ra>
